<compile_context>
chip_gen: v7x
topology: tpu7x:2x2x1
jax: 0.10.0
libtpu: 0.0.40
codegen_flags: <defaults>
</compile_context>

<pallas_src>
import functools

import jax
import jax.numpy as jnp
from jax.experimental import pallas as pl
from jax.experimental.pallas import tpu as pltpu


def _round_up(x, m):
    return ((x + m - 1) // m) * m


def critic_mlp_kernel(x_ref, w12_ref, b12_ref, w3_ref, b3_ref, w4_ref, b4_ref,
                      out_ref):
    # Fused layers 1+2: relu(x @ W12 + b12)   (layer 1 has no activation).
    h = jnp.dot(x_ref[...], w12_ref[...], preferred_element_type=jnp.float32)
    h = jnp.maximum(h + b12_ref[...], 0.0)

    # Layer 3: relu(h @ W3 + b3).  Cast back to the weight dtype so the MXU
    # runs the bf16 fast path when enabled; accumulate in f32.
    h = jnp.dot(h.astype(w3_ref.dtype), w3_ref[...],
                preferred_element_type=jnp.float32)
    h = jnp.maximum(h + b3_ref[...], 0.0)

    # Output layer: per-row scalar value; bias read from SMEM.
    # TODO(synk): output block is lane-width 1 (masked vst); store volume is
    # tiny (4 B/row) so the lane-dense-output rewrite (in-kernel transpose)
    # would cost more XLU work than it saves in store bandwidth.
    v = jnp.dot(h.astype(w4_ref.dtype), w4_ref[...],
                preferred_element_type=jnp.float32)
    out_ref[...] = (v + b4_ref[0, 0]).astype(out_ref.dtype)


@functools.partial(jax.jit, static_argnames=("block_b", "compute_dtype"))
def network_critic_forward(x, params, *, block_b=2048,
                           compute_dtype=jnp.float32):
    """x: [B, input_shape] f32. params: dict of transposed weights / biases."""
    B, F = x.shape

    # Fold layer 1 (activation-free) into layer 2 at wrapper time.
    w12 = params["w1"] @ params["w2"]                     # [F, H]
    b12 = params["b1"] @ params["w2"] + params["b2"]      # [1, H]
    w3, b3 = params["w3"], params["b3"]
    w4, b4 = params["w4"], params["b4"]
    H = w12.shape[1]

    # Batch tile: multiple of 8 (f32 sublanes), capped at block_b.
    bt = min(_round_up(block_b, 8), _round_up(B, 8))
    Bp = _round_up(B, bt)
    if Bp != B:
        x = jnp.pad(x, ((0, Bp - B), (0, 0)))

    # Matmul operands in compute_dtype (bf16 fast path on v6e/v7x);
    # biases stay f32 so the VPU add/ReLU runs in f32 (v5e-friendly).
    xc = x.astype(compute_dtype)
    w12c = w12.astype(compute_dtype)
    w3c = w3.astype(compute_dtype)
    w4c = w4.astype(compute_dtype)
    b12f = b12.astype(jnp.float32)
    b3f = b3.astype(jnp.float32)
    b4s = b4.reshape(1, 1).astype(jnp.float32)

    resident = lambda i: (0, 0)   # weights/biases: same block every grid step

    out = pl.pallas_call(
        critic_mlp_kernel,
        out_shape=jax.ShapeDtypeStruct((Bp, 1), jnp.float32),
        grid=(pl.cdiv(Bp, bt),),
        in_specs=[
            pl.BlockSpec((bt, F), lambda i: (i, 0)),          # x tile (streamed)
            pl.BlockSpec((F, H), resident),                   # fused W12
            pl.BlockSpec((1, H), resident),                   # fused b12
            pl.BlockSpec((H, H), resident),                   # W3
            pl.BlockSpec((1, H), resident),                   # b3
            pl.BlockSpec((H, 1), resident),                   # W4
            pl.BlockSpec(memory_space=pltpu.MemorySpace.SMEM),  # b4 scalar (whole array)
        ],
        out_specs=pl.BlockSpec((bt, 1), lambda i: (i, 0)),
        compiler_params=pltpu.CompilerParams(
            dimension_semantics=("parallel",)),               # v7x: 2 TCs split batch
    )(xc, w12c, b12f, w3c, b3f, w4c, b4s)

    return out[:B]


def init_params(key, input_shape, hidden=64):
    """Deterministic init mirroring nn.Linear shapes (stored transposed)."""
    keys = jax.random.split(key, 8)

    def uniform(k, shape, fan_in):
        bound = 1.0 / jnp.sqrt(jnp.float32(fan_in))
        return jax.random.uniform(k, shape, jnp.float32, -bound, bound)

    return {
        "w1": uniform(keys[0], (input_shape, hidden), input_shape),
        "b1": uniform(keys[1], (1, hidden), input_shape),
        "w2": uniform(keys[2], (hidden, hidden), hidden),
        "b2": uniform(keys[3], (1, hidden), hidden),
        "w3": uniform(keys[4], (hidden, hidden), hidden),
        "b3": uniform(keys[5], (1, hidden), hidden),
        "w4": uniform(keys[6], (hidden, 1), hidden),
        "b4": uniform(keys[7], (1, 1), hidden),
    }


def reference_forward(x, p):
    """Pure-JAX f32 reference matching the PyTorch forward() exactly."""
    h = x @ p["w1"] + p["b1"]                    # no activation (as in spec)
    h = jnp.maximum(h @ p["w2"] + p["b2"], 0.0)
    h = jnp.maximum(h @ p["w3"] + p["b3"], 0.0)
    return h @ p["w4"] + p["b4"]


if __name__ == "__main__":
    key = jax.random.PRNGKey(0)
    k_x, k_p = jax.random.split(key)

    B, INPUT_SHAPE, HIDDEN = 10, 16, 64   # B not a multiple of 8: tests padding
    x = jax.random.normal(k_x, (B, INPUT_SHAPE), jnp.float32)
    params = init_params(k_p, INPUT_SHAPE, HIDDEN)

    ref = reference_forward(x, params)

    # 1) f32 path, single-tile grid.
    out_f32 = jax.block_until_ready(network_critic_forward(x, params))
    assert out_f32.shape == (B, 1), out_f32.shape
    assert jnp.allclose(out_f32, ref, atol=1e-4, rtol=1e-4), "f32 mismatch"

    # 2) f32 path with a tiny tile to exercise a multi-step (pipelined) grid.
    out_tiled = jax.block_until_ready(
        network_critic_forward(x, params, block_b=8))
    assert jnp.allclose(out_tiled, ref, atol=1e-4, rtol=1e-4), "tiled mismatch"

    # 3) bf16 matmul operands, f32 accumulation (v6e/v7x fast path).
    out_bf16 = jax.block_until_ready(
        network_critic_forward(x, params, compute_dtype=jnp.bfloat16))
    assert out_bf16.shape == (B, 1), out_bf16.shape
    assert jnp.allclose(out_bf16, ref, atol=1e-1, rtol=1e-1), "bf16 mismatch"

    print("KERNEL_OK")
</pallas_src>

<mosaic_0001>
module attributes {stable_mosaic.version = 11 : i64} {
  func.func @critic_mlp_kernel(%arg0: i32, %arg1: memref<16x16xf32, #tpu.memory_space<vmem>>, %arg2: memref<16x64xf32, #tpu.memory_space<vmem>>, %arg3: memref<1x64xf32, #tpu.memory_space<vmem>>, %arg4: memref<64x64xf32, #tpu.memory_space<vmem>>, %arg5: memref<1x64xf32, #tpu.memory_space<vmem>>, %arg6: memref<64x1xf32, #tpu.memory_space<vmem>>, %arg7: memref<1x1xf32, #tpu.memory_space<smem>>, %arg8: memref<16x1xf32, #tpu.memory_space<vmem>>) attributes {dimension_semantics = [#tpu.dimension_semantics<parallel>], iteration_bounds = array<i64: 1>, scalar_prefetch = 0 : i64, scratch_operands = 0 : i64, tpu.core_type = #tpu.core_type<tc>, window_params = [{transform_indices = @transform_0, window_bounds = array<i64: 16, 16>}, {pipeline_mode = #tpu.pipeline_mode<synchronous>, transform_indices = @transform_1, window_bounds = array<i64: 16, 64>}, {pipeline_mode = #tpu.pipeline_mode<synchronous>, transform_indices = @transform_2, window_bounds = array<i64: 1, 64>}, {pipeline_mode = #tpu.pipeline_mode<synchronous>, transform_indices = @transform_3, window_bounds = array<i64: 64, 64>}, {pipeline_mode = #tpu.pipeline_mode<synchronous>, transform_indices = @transform_4, window_bounds = array<i64: 1, 64>}, {pipeline_mode = #tpu.pipeline_mode<synchronous>, transform_indices = @transform_5, window_bounds = array<i64: 64, 1>}, {transform_indices = @transform_6, window_bounds = array<i64: 1, 1>}, {transform_indices = @transform_7, window_bounds = array<i64: 16, 1>}]} {
    %c0 = arith.constant 0 : index
    %c0_0 = arith.constant 0 : index
    %0 = vector.load %arg1[%c0, %c0_0] : memref<16x16xf32, #tpu.memory_space<vmem>>, vector<16x16xf32>
    %c0_1 = arith.constant 0 : index
    %c0_2 = arith.constant 0 : index
    %1 = vector.load %arg2[%c0_1, %c0_2] : memref<16x64xf32, #tpu.memory_space<vmem>>, vector<16x64xf32>
    %cst = arith.constant dense<0.000000e+00> : vector<16x64xf32>
    %2 = tpu.matmul %0, %1, %cst {dimension_numbers = #tpu.dot_dimension_numbers<[1], [0], [0], [1], [0, 0, 1, 1], [], []>} : vector<16x16xf32>, vector<16x64xf32>, vector<16x64xf32> -> vector<16x64xf32>
    %c0_3 = arith.constant 0 : index
    %c0_4 = arith.constant 0 : index
    %3 = vector.load %arg3[%c0_3, %c0_4] : memref<1x64xf32, #tpu.memory_space<vmem>>, vector<1x64xf32>
    %4 = vector.broadcast %3 : vector<1x64xf32> to vector<16x64xf32>
    %5 = arith.addf %2, %4 : vector<16x64xf32>
    %cst_5 = arith.constant 0.000000e+00 : f32
    %6 = vector.broadcast %cst_5 : f32 to vector<16x64xf32>
    %7 = arith.maximumf %5, %6 : vector<16x64xf32>
    %c0_6 = arith.constant 0 : index
    %c0_7 = arith.constant 0 : index
    %8 = vector.load %arg4[%c0_6, %c0_7] : memref<64x64xf32, #tpu.memory_space<vmem>>, vector<64x64xf32>
    %cst_8 = arith.constant dense<0.000000e+00> : vector<16x64xf32>
    %9 = tpu.matmul %7, %8, %cst_8 {dimension_numbers = #tpu.dot_dimension_numbers<[1], [0], [0], [1], [0, 0, 1, 1], [], []>} : vector<16x64xf32>, vector<64x64xf32>, vector<16x64xf32> -> vector<16x64xf32>
    %c0_9 = arith.constant 0 : index
    %c0_10 = arith.constant 0 : index
    %10 = vector.load %arg5[%c0_9, %c0_10] : memref<1x64xf32, #tpu.memory_space<vmem>>, vector<1x64xf32>
    %11 = vector.broadcast %10 : vector<1x64xf32> to vector<16x64xf32>
    %12 = arith.addf %9, %11 : vector<16x64xf32>
    %cst_11 = arith.constant 0.000000e+00 : f32
    %13 = vector.broadcast %cst_11 : f32 to vector<16x64xf32>
    %14 = arith.maximumf %12, %13 : vector<16x64xf32>
    %c0_12 = arith.constant 0 : index
    %c0_13 = arith.constant 0 : index
    %15 = vector.load %arg6[%c0_12, %c0_13] : memref<64x1xf32, #tpu.memory_space<vmem>>, vector<64x1xf32>
    %cst_14 = arith.constant dense<0.000000e+00> : vector<16x1xf32>
    %16 = tpu.matmul %14, %15, %cst_14 {dimension_numbers = #tpu.dot_dimension_numbers<[1], [0], [0], [1], [0, 0, 1, 1], [], []>} : vector<16x64xf32>, vector<64x1xf32>, vector<16x1xf32> -> vector<16x1xf32>
    %c0_15 = arith.constant 0 : index
    %c0_16 = arith.constant 0 : index
    %17 = memref.load %arg7[%c0_15, %c0_16] : memref<1x1xf32, #tpu.memory_space<smem>>
    %18 = vector.broadcast %17 : f32 to vector<16x1xf32>
    %19 = arith.addf %16, %18 : vector<16x1xf32>
    %c0_17 = arith.constant 0 : index
    %c0_18 = arith.constant 0 : index
    %20 = vector.load %arg8[%c0_17, %c0_18] : memref<16x1xf32, #tpu.memory_space<vmem>>, vector<16x1xf32>
    tpu.vector_store %arg8[%c0_17, %c0_18], %19 {strides = array<i32>} : memref<16x1xf32, #tpu.memory_space<vmem>>, vector<16x1xf32>,
    return
  }
  func.func @transform_0(%arg0: i32) -> (i32, i32) {
    %c0_i32 = arith.constant 0 : i32
    %c0_i32_0 = arith.constant 0 : i32
    return %arg0, %c0_i32 : i32, i32
  }
  func.func @transform_1(%arg0: i32) -> (i32, i32) {
    %c0_i32 = arith.constant 0 : i32
    %c0_i32_0 = arith.constant 0 : i32
    %c0_i32_1 = arith.constant 0 : i32
    return %c0_i32, %c0_i32_0 : i32, i32
  }
  func.func @transform_2(%arg0: i32) -> (i32, i32) {
    %c0_i32 = arith.constant 0 : i32
    %c0_i32_0 = arith.constant 0 : i32
    %c0_i32_1 = arith.constant 0 : i32
    return %c0_i32, %c0_i32_0 : i32, i32
  }
  func.func @transform_3(%arg0: i32) -> (i32, i32) {
    %c0_i32 = arith.constant 0 : i32
    %c0_i32_0 = arith.constant 0 : i32
    %c0_i32_1 = arith.constant 0 : i32
    return %c0_i32, %c0_i32_0 : i32, i32
  }
  func.func @transform_4(%arg0: i32) -> (i32, i32) {
    %c0_i32 = arith.constant 0 : i32
    %c0_i32_0 = arith.constant 0 : i32
    %c0_i32_1 = arith.constant 0 : i32
    return %c0_i32, %c0_i32_0 : i32, i32
  }
  func.func @transform_5(%arg0: i32) -> (i32, i32) {
    %c0_i32 = arith.constant 0 : i32
    %c0_i32_0 = arith.constant 0 : i32
    %c0_i32_1 = arith.constant 0 : i32
    return %c0_i32, %c0_i32_0 : i32, i32
  }
  func.func @transform_6(%arg0: i32) -> (i32, i32) {
    %c0_i32 = arith.constant 0 : i32
    %c0_i32_0 = arith.constant 0 : i32
    %c0_i32_1 = arith.constant 0 : i32
    return %c0_i32, %c0_i32_0 : i32, i32
  }
  func.func @transform_7(%arg0: i32) -> (i32, i32) {
    %c0_i32 = arith.constant 0 : i32
    %c0_i32_0 = arith.constant 0 : i32
    return %arg0, %c0_i32 : i32, i32
  }
}

</mosaic_0001>

<bundles_post_ra>
// kernel: network_critic_forward.1
= control target key start
LH: loop header
LB: loop body
LE: loop exit
PB: predicated region body
PF: predicated region fallthrough
CT: control target
= control target key end

     0   :  { %vm38_vm0 = vcmask 130048   ;;  %vm137_vm1 = vcmask 523264   ;;  %vm312_vm2 = vcmask 7168   ;;  %s553_s1 = inlined_call_operand.vmem [shape: f32[16,64], index: 1, kind: input, shape index: {}]   ;;  %s554_s0 = inlined_call_operand.vmem [shape: f32[16,16], index: 0, kind: input, shape index: {}]   ;;  %s555_s3 = inlined_call_operand.vmem [shape: f32[64,64], index: 3, kind: input, shape index: {}]   ;;  %s556_s5 = inlined_call_operand.vmem [shape: f32[64,1], index: 5, kind: input, shape index: {}]   ;;  %s557_s2 = inlined_call_operand.vmem [shape: f32[1,64], index: 2, kind: input, shape index: {}]   ;;  %s558_s4 = inlined_call_operand.vmem [shape: f32[1,64], index: 4, kind: input, shape index: {}]   ;;  %s559_s6 = inlined_call_operand.<no memory space> [shape: f32[1,1], index: 6, kind: input, shape index: {}]   ;;  %s560_s7 = inlined_call_operand.vmem [shape: f32[16,1], index: 7, kind: output, shape index: {}]  }
   0x1   :  { %v29_v0 = vld [vmem:[%s553_s1] sm:$0xff]  ;;  %v30_v1 = vld [vmem:[%s553_s1 + $0x8] sm:$0xff]  ;;  %v124_v7 = vld [vmem:[%s555_s3 + $0x10] sm:$0xff]  ;;  %v230_v43 = vstv %s559_s6 }
   0x2   :  { %v27_v2 = vld [vmem:[%s554_s0] sm:$0xff]  ;;  %v396_v3 = vpack.c.bf16 %v30_v1, %v29_v0  ;;  %v123_v5 = vld [vmem:[%s555_s3 + $0x8] sm:$0xff]  ;;  %v125_v8 = vld [vmem:[%s555_s3 + $0x18] sm:$0xff] }
   0x3   :  { %355 = vmatprep.mubr.msk.f32.mxu0 %vm38_vm0, %v27_v2  ;;  %v122_v4 = vld [vmem:[%s555_s3] sm:$0xff]  ;;  %v404_v9 = vpack.c.bf16 %v125_v8, %v124_v7  ;;  %v127_v11 = vld [vmem:[%s555_s3 + $0x28] sm:$0xff]  ;;  %v128_v14 = vld [vmem:[%s555_s3 + $0x30] sm:$0xff] }
   0x4   :  { %v400_v6 = vpack.c.bf16 %v123_v5, %v122_v4  ;;  %397 = vmatprep.subr.bf16.mxu0 %v396_v3  ;;  %v126_v10 = vld [vmem:[%s555_s3 + $0x20] sm:$0xff]  ;;  %v28_v12 = vld [vmem:[%s554_s0 + $0x8] sm:$0xff]  ;;  %v129_v15 = vld [vmem:[%s555_s3 + $0x38] sm:$0xff] }
   0x5   :  { %399 = vmatpush3.bf16.msra.mxu0 %v396_v3  ;;  %v408_v13 = vpack.c.bf16 %v127_v11, %v126_v10  ;;  %v412_v16 = vpack.c.bf16 %v129_v15, %v128_v14  ;;  %v221_v17 = vld [vmem:[%s556_s5] sm:$0xff]  ;;  %v222_v18 = vld [vmem:[%s556_s5 + $0x8] sm:$0xff]  ;;  %v223_v19 = vld [vmem:[%s556_s5 + $0x10] sm:$0xff] }
   0x6   :  { %401 = vmatprep.subr.bf16.mxu1 %v400_v6  ;;  %v416_v20 = vpack.c.bf16 %v222_v18, %v221_v17  ;;  %v224_v21 = vld [vmem:[%s556_s5 + $0x18] sm:$0xff]  ;;  %v225_v23 = vld [vmem:[%s556_s5 + $0x20] sm:$0xff]  ;;  %v226_v24 = vld [vmem:[%s556_s5 + $0x28] sm:$0xff] }
   0x7   :  { %403 = vmatpush3.bf16.msra.mxu1 %v400_v6  ;;  %v420_v22 = vpack.c.bf16 %v224_v21, %v223_v19  ;;  %v424_v25 = vpack.c.bf16 %v226_v24, %v225_v23  ;;  %v319_v26 = vld [vmem:[%s557_s2] ss:$0 sm:$0xff]  ;;  %v227_v33 = vld [vmem:[%s556_s5 + $0x30] sm:$0xff]  ;;  %v228_v34 = vld [vmem:[%s556_s5 + $0x38] sm:$0xff] }
   0x8   :  { %405 = vmatprep.subr.bf16.mxu1 %v404_v9  ;;  %356 = vmatmul.mubr.msk.f32.vlgmr.msra.gmra.mrb[0].mxu0 %vm38_vm0, %v28_v12  ;;  %v428_v35 = vpack.c.bf16 %v228_v34, %v227_v33  ;;  %v322_v36 = vld [vmem:[%s558_s4] ss:$0 sm:$0xff] }
   0x9   :  { %417 = vmatprep.subr.bf16.mxu0 %v416_v20 }
   0xa   :  { %419 = vmatpush3.bf16.msra.mxu0 %v416_v20 }
   0xb   :  { %407 = vmatpush3.bf16.msra.mxu1 %v404_v9  ;;  %421 = vmatprep.subr.bf16.mxu0 %v420_v22 }
   0xc   :  { %409 = vmatprep.subr.bf16.mxu1 %v408_v13 }
   0xe   :  { %423 = vmatpush3.bf16.msra.mxu0 %v420_v22 }
   0xf   :  { %411 = vmatpush3.bf16.msra.mxu1 %v408_v13  ;;  %425 = vmatprep.subr.bf16.mxu0 %v424_v25 }
  0x10   :  { %413 = vmatprep.subr.bf16.mxu1 %v412_v16 }
  0x12   :  { %427 = vmatpush3.bf16.msra.mxu0 %v424_v25 }
  0x13   :  { %415 = vmatpush3.bf16.msra.mxu1 %v412_v16  ;;  %429 = vmatprep.subr.bf16.mxu0 %v428_v35 }
  0x16   :  { %431 = vmatpush3.bf16.msra.mxu0 %v428_v35 }
  0xdb   :  { %v357_v27 = vpop.f32.mrb[0].mxu0 }
  0xdc   :  { %v117_v28 = vadd.f32 %v357_v27, %v319_v26  ;;  %v111_v29 = vpop.f32.mrb[1].mxu0 }
  0xdd   :  { %v112_v30 = vadd.f32 %v319_v26, %v111_v29 }
  0xde   :  { %v121_v32 = vmax.f32 %v117_v28, 0.0 }
  0xdf   :  { %v120_v31 = vmax.f32 %v112_v30, 0.0 }
  0xe1   :  { %374 = vmatprep.mubr.msk.f32.mxu1 %vm137_vm1, %v120_v31 }
  0xe2   :  { %375 = vmatmul.mubr.msk.f32.vlgmr.msra.gmra.mrb[0].mxu1 %vm137_vm1, %v121_v32 }
 0x1b5   :  { %v376_v37 = vpop.f32.mrb[0].mxu1 }
 0x1b6   :  { %v216_v38 = vadd.f32 %v376_v37, %v322_v36  ;;  %v210_v39 = vpop.f32.mrb[1].mxu1 }
 0x1b7   :  { %v211_v40 = vadd.f32 %v322_v36, %v210_v39 }
 0x1b8   :  { %v220_v42 = vmax.f32 %v216_v38, 0.0 }
 0x1b9   :  { %v219_v41 = vmax.f32 %v211_v40, 0.0 }
 0x1bb   :  { %393 = vmatprep.mubr.msk.f32.mxu0 %vm137_vm1, %v219_v41 }
 0x1bc   :  { %394 = vmatmul.mubr.msk.f32.vlgmr.msra.gmra.mrb[2].mxu0 %vm137_vm1, %v220_v42 }
 0x28f   :  { %v395_v44 = vpop.f32.mrb[2].mxu0 }
 0x290   :  { %v309_v45 = vadd.f32 %v395_v44, %v230_v43  ;;  %v303_v46 = vpop.f32.mrb[3].mxu0 }
 0x291   :  { %v304_v47 = vadd.f32 %v303_v46, %v230_v43 }
 0x292   :  { %314 = vst.msk [vmem:[%s560_s7 + $0x8] sm:$0xff] %vm312_vm2, %v309_v45 }
 0x293   :  { %313 = vst.msk [vmem:[%s560_s7] sm:$0xff] %vm312_vm2, %v304_v47 }

</bundles_post_ra>
